<compile_context>
chip_gen: v6e
topology: v6e:2x2x1
jax: 0.10.0
libtpu: 0.0.40
codegen_flags: <defaults>
</compile_context>

<pallas_src>
import functools

import jax
import jax.numpy as jnp
import numpy as np
from jax.experimental import pallas as pl
from jax.experimental.pallas import tpu as pltpu

EPS = 1e-5
# MXU operand dtype only; accumulation and all elementwise math stay f32.
MXU_DTYPE = jnp.bfloat16


def pack_conv_weight_banded(w9, W):
    """(9, Cin, Cout) [index ky*3+kx] -> (3, W*Cin, W*Cout) per-ky blocks.

    Block ky multiplies the input row h+ky-1; inside a block, entry
    [wi*Cin + ci, wo*Cout + co] = w[ky, kx, ci, co] with kx = wi - wo + 1,
    so the 'SAME' zero padding along W is implicit in the band structure.
    """
    w9 = np.asarray(w9, dtype=np.float32)
    cin, cout = w9.shape[1], w9.shape[2]
    wk = w9.reshape(3, 3, cin, cout)
    big = np.zeros((3, W, cin, W, cout), np.float32)
    for ky in range(3):
        for kx in range(3):
            for wo in range(W):
                wi = wo + kx - 1
                if 0 <= wi < W:
                    big[ky, wi, :, wo, :] = wk[ky, kx]
    return big.reshape(3, W * cin, W * cout)


def expand_to_lanes(v, W, C):
    """(1, C) or (C,) per-channel param -> (1, W*C) lane layout (c = lane % C)."""
    return jnp.tile(jnp.asarray(v, jnp.float32).reshape(1, C), (1, W))


def prepare_block_params(w1, w2, g1, b1, g2, b2, W):
    """Host-side, one-time packing (hoisted out of the per-call path)."""
    C = w1.shape[1]
    assert w1.shape[2] == C and w2.shape[1:] == (C, C), \
        "identity residual requires inplanes == planes"
    assert W & (W - 1) == 0, "lane butterfly assumes W is a power of two"
    return dict(
        w1=jnp.asarray(pack_conv_weight_banded(w1, W), MXU_DTYPE),
        w2=jnp.asarray(pack_conv_weight_banded(w2, W), MXU_DTYPE),
        g1=expand_to_lanes(g1, W, C), b1=expand_to_lanes(b1, W, C),
        g2=expand_to_lanes(g2, W, C), b2=expand_to_lanes(b2, W, C),
    )


def basic_block_kernel(x_ref, w1_ref, w2_ref, g1_ref, b1_ref, g2_ref, b2_ref,
                       o_ref, *, N, H, W, C):
    NH, WC = N * H, W * C
    inv_cnt = 1.0 / float(N * H * W)

    def conv3x3_banded(h, w_ref, z_row):
        # Three accumulating MXU dots (ky = -1, 0, +1); bf16 operands,
        # f32 accumulation.  Center tap reuses `h` directly.
        h3 = h.reshape(N, H, WC)
        h_up = jnp.concatenate([z_row, h3[:, :H - 1, :]], axis=1).reshape(NH, WC)
        h_dn = jnp.concatenate([h3[:, 1:, :], z_row], axis=1).reshape(NH, WC)
        acc = jnp.dot(h_up.astype(MXU_DTYPE), w_ref[0],
                      preferred_element_type=jnp.float32)
        acc = acc + jnp.dot(h.astype(MXU_DTYPE), w_ref[1],
                            preferred_element_type=jnp.float32)
        acc = acc + jnp.dot(h_dn.astype(MXU_DTYPE), w_ref[2],
                            preferred_element_type=jnp.float32)
        return acc

    def bn_scale_shift(acc, g_l, b_l):
        # Per-lane sums over rows (sublane reduction), then a log2(W) lane
        # butterfly (pltpu.roll by multiples of C) so every lane ends up
        # holding its channel's full sum — no selector matmuls.
        col_sum = jnp.sum(acc, axis=0, keepdims=True)        # (1, WC)
        col_sq = jnp.sum(acc * acc, axis=0, keepdims=True)   # (1, WC)
        stats = jnp.concatenate([col_sum, col_sq], axis=0)   # (2, WC)
        shift = C
        while shift < WC:
            stats = stats + pltpu.roll(stats, shift, axis=1)
            shift *= 2
        mean = stats[0:1, :] * inv_cnt                       # (1, WC) lane-bcast
        var = stats[1:2, :] * inv_cnt - mean * mean          # biased var
        scale = g_l * jax.lax.rsqrt(var + EPS)
        return scale, b_l - mean * scale                     # (1, WC) each

    x = x_ref[...].astype(jnp.float32)        # (NH, WC) lane-dense input
    z_row = jnp.zeros((N, 1, WC), jnp.float32)

    # ---- conv1 (3 split-K taps) + bn1 (batch stats) + relu ----
    acc1 = conv3x3_banded(x, w1_ref, z_row)
    s1, t1 = bn_scale_shift(acc1, g1_ref[...], b1_ref[...])
    h1 = jnp.maximum(acc1 * s1 + t1, 0.0)

    # ---- conv2 + bn2 + identity residual + relu ----
    acc2 = conv3x3_banded(h1, w2_ref, z_row)
    s2, t2 = bn_scale_shift(acc2, g2_ref[...], b2_ref[...])
    o_ref[...] = jnp.maximum(acc2 * s2 + t2 + x, 0.0).astype(o_ref.dtype)


def basic_block_apply(x_nchw, params):
    """x_nchw: (N, C, H, W) float32; params from prepare_block_params()."""
    N, C, H, W = x_nchw.shape
    WC, NH = W * C, N * H

    # Lane-dense layout: one image row (W*C lanes) per sublane row.
    x_flat = jnp.transpose(x_nchw, (0, 2, 3, 1)).reshape(NH, WC)

    kernel = functools.partial(basic_block_kernel, N=N, H=H, W=W, C=C)

    out_flat = pl.pallas_call(
        kernel,
        out_shape=jax.ShapeDtypeStruct((NH, WC), x_nchw.dtype),
        grid=(1,),
        in_specs=[
            pl.BlockSpec((NH, WC), lambda i: (0, 0)),         # x (lane-dense)
            pl.BlockSpec((3, WC, WC), lambda i: (0, 0, 0)),   # conv1 ky-blocks
            pl.BlockSpec((3, WC, WC), lambda i: (0, 0, 0)),   # conv2 ky-blocks
            pl.BlockSpec((1, WC), lambda i: (0, 0)),          # gamma1 (lanes)
            pl.BlockSpec((1, WC), lambda i: (0, 0)),          # beta1
            pl.BlockSpec((1, WC), lambda i: (0, 0)),          # gamma2
            pl.BlockSpec((1, WC), lambda i: (0, 0)),          # beta2
        ],
        out_specs=pl.BlockSpec((NH, WC), lambda i: (0, 0)),
        compiler_params=pltpu.CompilerParams(
            dimension_semantics=("arbitrary",)),
    )(x_flat, params["w1"], params["w2"], params["g1"], params["b1"],
      params["g2"], params["b2"])

    return jnp.transpose(out_flat.reshape(N, H, W, C), (0, 3, 1, 2))


def reference_forward(x_nchw, w1, w2, g1, b1, g2, b2):
    """Pure-JAX f32 reference of BasicBlock.forward (training-mode BN)."""
    x = jnp.transpose(x_nchw, (0, 2, 3, 1))

    def conv(h, w):
        wk = w.reshape(3, 3, w.shape[1], w.shape[2])
        return jax.lax.conv_general_dilated(
            h, wk, (1, 1), 'SAME',
            dimension_numbers=('NHWC', 'HWIO', 'NHWC'))

    def bn(h, g, b):
        m = h.mean(axis=(0, 1, 2))
        v = ((h - m) ** 2).mean(axis=(0, 1, 2))
        return (h - m) * jax.lax.rsqrt(v + EPS) * g.reshape(-1) + b.reshape(-1)

    h = jnp.maximum(bn(conv(x, w1), g1, b1), 0.0)
    h = bn(conv(h, w2), g2, b2)
    out = jnp.maximum(h + x, 0.0)
    return jnp.transpose(out, (0, 3, 1, 2))


if __name__ == "__main__":
    # BasicBlock(inplanes=8, planes=8, stride=1, dilation=1, downsample=None)
    # C=8, W=16 -> W*C = 128 lanes (exactly lane-dense).
    N, C, H, W = 2, 8, 16, 16
    key = jax.random.PRNGKey(0)
    kx, k1, k2 = jax.random.split(key, 3)

    x = jax.random.normal(kx, (N, C, H, W), jnp.float32)

    # conv weights stored as (9, Cin, Cout) == (ky*3+kx, in, out)
    fan_in = 3 * 3 * C
    w1 = jax.random.normal(k1, (9, C, C), jnp.float32) / jnp.sqrt(fan_in)
    w2 = jax.random.normal(k2, (9, C, C), jnp.float32) / jnp.sqrt(fan_in)

    # BatchNorm2d default init: gamma=1, beta=0
    g1 = jnp.ones((1, C), jnp.float32)
    b1 = jnp.zeros((1, C), jnp.float32)
    g2 = jnp.ones((1, C), jnp.float32)
    b2 = jnp.zeros((1, C), jnp.float32)

    # One-time host-side packing (hoisted out of the per-call path).
    params = prepare_block_params(w1, w2, g1, b1, g2, b2, W)

    out = basic_block_apply(x, params)
    out = jax.block_until_ready(out)

    ref = reference_forward(x, w1, w2, g1, b1, g2, b2)
    assert out.shape == (N, C, H, W)
    # Tolerance loosened vs. the pure-f32 version: MXU operands are bf16
    # (weights quantized at pack time), BN/residual math remains f32.
    assert jnp.allclose(out, ref, atol=5e-2, rtol=5e-2), \
        f"max abs err {jnp.max(jnp.abs(out - ref))}"

    print("KERNEL_OK")
</pallas_src>

<mosaic_0001>
module attributes {stable_mosaic.version = 11 : i64} {
  func.func @basic_block_kernel(%arg0: i32, %arg1: memref<32x128xf32, #tpu.memory_space<vmem>>, %arg2: memref<3x128x128xbf16, #tpu.memory_space<vmem>>, %arg3: memref<3x128x128xbf16, #tpu.memory_space<vmem>>, %arg4: memref<1x128xf32, #tpu.memory_space<vmem>>, %arg5: memref<1x128xf32, #tpu.memory_space<vmem>>, %arg6: memref<1x128xf32, #tpu.memory_space<vmem>>, %arg7: memref<1x128xf32, #tpu.memory_space<vmem>>, %arg8: memref<32x128xf32, #tpu.memory_space<vmem>>) attributes {dimension_semantics = [#tpu.dimension_semantics<arbitrary>], iteration_bounds = array<i64: 1>, scalar_prefetch = 0 : i64, scratch_operands = 0 : i64, tpu.core_type = #tpu.core_type<tc>, window_params = [{pipeline_mode = #tpu.pipeline_mode<synchronous>, transform_indices = @transform_0, window_bounds = array<i64: 32, 128>}, {pipeline_mode = #tpu.pipeline_mode<synchronous>, transform_indices = @transform_1, window_bounds = array<i64: 3, 128, 128>}, {pipeline_mode = #tpu.pipeline_mode<synchronous>, transform_indices = @transform_2, window_bounds = array<i64: 3, 128, 128>}, {pipeline_mode = #tpu.pipeline_mode<synchronous>, transform_indices = @transform_3, window_bounds = array<i64: 1, 128>}, {pipeline_mode = #tpu.pipeline_mode<synchronous>, transform_indices = @transform_4, window_bounds = array<i64: 1, 128>}, {pipeline_mode = #tpu.pipeline_mode<synchronous>, transform_indices = @transform_5, window_bounds = array<i64: 1, 128>}, {pipeline_mode = #tpu.pipeline_mode<synchronous>, transform_indices = @transform_6, window_bounds = array<i64: 1, 128>}, {pipeline_mode = #tpu.pipeline_mode<synchronous>, transform_indices = @transform_7, window_bounds = array<i64: 32, 128>}]} {
    %c0 = arith.constant 0 : index
    %c0_0 = arith.constant 0 : index
    %0 = vector.load %arg1[%c0, %c0_0] : memref<32x128xf32, #tpu.memory_space<vmem>>, vector<32x128xf32>
    %cst = arith.constant 0.000000e+00 : f32
    %1 = vector.broadcast %cst : f32 to vector<2x1x128xf32>
    %2 = vector.shape_cast %0 : vector<32x128xf32> to vector<2x16x128xf32>
    %3 = vector.extract_strided_slice %2 {offsets = [0, 0, 0], sizes = [2, 15, 128], strides = [1, 1, 1]} : vector<2x16x128xf32> to vector<2x15x128xf32>
    %4 = tpu.concatenate %1, %3 in 1 : vector<2x1x128xf32>, vector<2x15x128xf32> -> vector<2x16x128xf32>
    %5 = vector.shape_cast %4 : vector<2x16x128xf32> to vector<32x128xf32>
    %6 = vector.extract_strided_slice %2 {offsets = [0, 1, 0], sizes = [2, 15, 128], strides = [1, 1, 1]} : vector<2x16x128xf32> to vector<2x15x128xf32>
    %7 = tpu.concatenate %6, %1 in 1 : vector<2x15x128xf32>, vector<2x1x128xf32> -> vector<2x16x128xf32>
    %8 = vector.shape_cast %7 : vector<2x16x128xf32> to vector<32x128xf32>
    %9 = arith.truncf %5 : vector<32x128xf32> to vector<32x128xbf16>
    %c0_1 = arith.constant 0 : index
    %c0_2 = arith.constant 0 : index
    %c0_3 = arith.constant 0 : index
    %10 = vector.load %arg2[%c0_1, %c0_2, %c0_3] : memref<3x128x128xbf16, #tpu.memory_space<vmem>>, vector<1x128x128xbf16>
    %11 = vector.shape_cast %10 : vector<1x128x128xbf16> to vector<128x128xbf16>
    %cst_4 = arith.constant dense<0.000000e+00> : vector<32x128xf32>
    %12 = tpu.matmul %9, %11, %cst_4 {dimension_numbers = #tpu.dot_dimension_numbers<[1], [0], [0], [1], [0, 0, 1, 1], [], []>} : vector<32x128xbf16>, vector<128x128xbf16>, vector<32x128xf32> -> vector<32x128xf32>
    %13 = arith.truncf %0 : vector<32x128xf32> to vector<32x128xbf16>
    %c1 = arith.constant 1 : index
    %c0_5 = arith.constant 0 : index
    %c0_6 = arith.constant 0 : index
    %14 = vector.load %arg2[%c1, %c0_5, %c0_6] : memref<3x128x128xbf16, #tpu.memory_space<vmem>>, vector<1x128x128xbf16>
    %15 = vector.shape_cast %14 : vector<1x128x128xbf16> to vector<128x128xbf16>
    %cst_7 = arith.constant dense<0.000000e+00> : vector<32x128xf32>
    %16 = tpu.matmul %13, %15, %cst_7 {dimension_numbers = #tpu.dot_dimension_numbers<[1], [0], [0], [1], [0, 0, 1, 1], [], []>} : vector<32x128xbf16>, vector<128x128xbf16>, vector<32x128xf32> -> vector<32x128xf32>
    %17 = arith.addf %12, %16 : vector<32x128xf32>
    %18 = arith.truncf %8 : vector<32x128xf32> to vector<32x128xbf16>
    %c2 = arith.constant 2 : index
    %c0_8 = arith.constant 0 : index
    %c0_9 = arith.constant 0 : index
    %19 = vector.load %arg2[%c2, %c0_8, %c0_9] : memref<3x128x128xbf16, #tpu.memory_space<vmem>>, vector<1x128x128xbf16>
    %20 = vector.shape_cast %19 : vector<1x128x128xbf16> to vector<128x128xbf16>
    %cst_10 = arith.constant dense<0.000000e+00> : vector<32x128xf32>
    %21 = tpu.matmul %18, %20, %cst_10 {dimension_numbers = #tpu.dot_dimension_numbers<[1], [0], [0], [1], [0, 0, 1, 1], [], []>} : vector<32x128xbf16>, vector<128x128xbf16>, vector<32x128xf32> -> vector<32x128xf32>
    %22 = arith.addf %17, %21 : vector<32x128xf32>
    %c0_11 = arith.constant 0 : index
    %c0_12 = arith.constant 0 : index
    %23 = vector.load %arg4[%c0_11, %c0_12] : memref<1x128xf32, #tpu.memory_space<vmem>>, vector<1x128xf32>
    %c0_13 = arith.constant 0 : index
    %c0_14 = arith.constant 0 : index
    %24 = vector.load %arg5[%c0_13, %c0_14] : memref<1x128xf32, #tpu.memory_space<vmem>>, vector<1x128xf32>
    %cst_15 = arith.constant dense<0.000000e+00> : vector<128xf32>
    %25 = vector.multi_reduction <add>, %22, %cst_15 [0] : vector<32x128xf32> to vector<128xf32>
    %26 = vector.shape_cast %25 : vector<128xf32> to vector<1x128xf32>
    %27 = arith.mulf %22, %22 : vector<32x128xf32>
    %cst_16 = arith.constant dense<0.000000e+00> : vector<128xf32>
    %28 = vector.multi_reduction <add>, %27, %cst_16 [0] : vector<32x128xf32> to vector<128xf32>
    %29 = vector.shape_cast %28 : vector<128xf32> to vector<1x128xf32>
    %30 = tpu.concatenate %26, %29 in 0 : vector<1x128xf32>, vector<1x128xf32> -> vector<2x128xf32>
    %c8_i32 = arith.constant 8 : i32
    %31 = tpu.dynamic_rotate %30 by %c8_i32 dim 1 : vector<2x128xf32>, i32 -> vector<2x128xf32>
    %32 = arith.addf %30, %31 : vector<2x128xf32>
    %c16_i32 = arith.constant 16 : i32
    %33 = tpu.dynamic_rotate %32 by %c16_i32 dim 1 : vector<2x128xf32>, i32 -> vector<2x128xf32>
    %34 = arith.addf %32, %33 : vector<2x128xf32>
    %c32_i32 = arith.constant 32 : i32
    %35 = tpu.dynamic_rotate %34 by %c32_i32 dim 1 : vector<2x128xf32>, i32 -> vector<2x128xf32>
    %36 = arith.addf %34, %35 : vector<2x128xf32>
    %c64_i32 = arith.constant 64 : i32
    %37 = tpu.dynamic_rotate %36 by %c64_i32 dim 1 : vector<2x128xf32>, i32 -> vector<2x128xf32>
    %38 = arith.addf %36, %37 : vector<2x128xf32>
    %39 = vector.extract_strided_slice %38 {offsets = [0, 0], sizes = [1, 128], strides = [1, 1]} : vector<2x128xf32> to vector<1x128xf32>
    %cst_17 = arith.constant 0.001953125 : f32
    %40 = vector.broadcast %cst_17 : f32 to vector<1x128xf32>
    %41 = arith.mulf %39, %40 : vector<1x128xf32>
    %42 = vector.extract_strided_slice %38 {offsets = [1, 0], sizes = [1, 128], strides = [1, 1]} : vector<2x128xf32> to vector<1x128xf32>
    %cst_18 = arith.constant 0.001953125 : f32
    %43 = vector.broadcast %cst_18 : f32 to vector<1x128xf32>
    %44 = arith.mulf %42, %43 : vector<1x128xf32>
    %45 = arith.mulf %41, %41 : vector<1x128xf32>
    %46 = arith.subf %44, %45 : vector<1x128xf32>
    %cst_19 = arith.constant 9.99999974E-6 : f32
    %47 = vector.broadcast %cst_19 : f32 to vector<1x128xf32>
    %48 = arith.addf %46, %47 : vector<1x128xf32>
    %49 = math.rsqrt %48 : vector<1x128xf32>
    %50 = arith.mulf %23, %49 : vector<1x128xf32>
    %51 = arith.mulf %41, %50 : vector<1x128xf32>
    %52 = arith.subf %24, %51 : vector<1x128xf32>
    %53 = vector.broadcast %50 : vector<1x128xf32> to vector<32x128xf32>
    %54 = arith.mulf %22, %53 : vector<32x128xf32>
    %55 = vector.broadcast %52 : vector<1x128xf32> to vector<32x128xf32>
    %56 = arith.addf %54, %55 : vector<32x128xf32>
    %cst_20 = arith.constant 0.000000e+00 : f32
    %57 = vector.broadcast %cst_20 : f32 to vector<32x128xf32>
    %58 = arith.maximumf %56, %57 : vector<32x128xf32>
    %59 = vector.shape_cast %58 : vector<32x128xf32> to vector<2x16x128xf32>
    %60 = vector.extract_strided_slice %59 {offsets = [0, 0, 0], sizes = [2, 15, 128], strides = [1, 1, 1]} : vector<2x16x128xf32> to vector<2x15x128xf32>
    %61 = tpu.concatenate %1, %60 in 1 : vector<2x1x128xf32>, vector<2x15x128xf32> -> vector<2x16x128xf32>
    %62 = vector.shape_cast %61 : vector<2x16x128xf32> to vector<32x128xf32>
    %63 = vector.extract_strided_slice %59 {offsets = [0, 1, 0], sizes = [2, 15, 128], strides = [1, 1, 1]} : vector<2x16x128xf32> to vector<2x15x128xf32>
    %64 = tpu.concatenate %63, %1 in 1 : vector<2x15x128xf32>, vector<2x1x128xf32> -> vector<2x16x128xf32>
    %65 = vector.shape_cast %64 : vector<2x16x128xf32> to vector<32x128xf32>
    %66 = arith.truncf %62 : vector<32x128xf32> to vector<32x128xbf16>
    %c0_21 = arith.constant 0 : index
    %c0_22 = arith.constant 0 : index
    %c0_23 = arith.constant 0 : index
    %67 = vector.load %arg3[%c0_21, %c0_22, %c0_23] : memref<3x128x128xbf16, #tpu.memory_space<vmem>>, vector<1x128x128xbf16>
    %68 = vector.shape_cast %67 : vector<1x128x128xbf16> to vector<128x128xbf16>
    %cst_24 = arith.constant dense<0.000000e+00> : vector<32x128xf32>
    %69 = tpu.matmul %66, %68, %cst_24 {dimension_numbers = #tpu.dot_dimension_numbers<[1], [0], [0], [1], [0, 0, 1, 1], [], []>} : vector<32x128xbf16>, vector<128x128xbf16>, vector<32x128xf32> -> vector<32x128xf32>
    %70 = arith.truncf %58 : vector<32x128xf32> to vector<32x128xbf16>
    %c1_25 = arith.constant 1 : index
    %c0_26 = arith.constant 0 : index
    %c0_27 = arith.constant 0 : index
    %71 = vector.load %arg3[%c1_25, %c0_26, %c0_27] : memref<3x128x128xbf16, #tpu.memory_space<vmem>>, vector<1x128x128xbf16>
    %72 = vector.shape_cast %71 : vector<1x128x128xbf16> to vector<128x128xbf16>
    %cst_28 = arith.constant dense<0.000000e+00> : vector<32x128xf32>
    %73 = tpu.matmul %70, %72, %cst_28 {dimension_numbers = #tpu.dot_dimension_numbers<[1], [0], [0], [1], [0, 0, 1, 1], [], []>} : vector<32x128xbf16>, vector<128x128xbf16>, vector<32x128xf32> -> vector<32x128xf32>
    %74 = arith.addf %69, %73 : vector<32x128xf32>
    %75 = arith.truncf %65 : vector<32x128xf32> to vector<32x128xbf16>
    %c2_29 = arith.constant 2 : index
    %c0_30 = arith.constant 0 : index
    %c0_31 = arith.constant 0 : index
    %76 = vector.load %arg3[%c2_29, %c0_30, %c0_31] : memref<3x128x128xbf16, #tpu.memory_space<vmem>>, vector<1x128x128xbf16>
    %77 = vector.shape_cast %76 : vector<1x128x128xbf16> to vector<128x128xbf16>
    %cst_32 = arith.constant dense<0.000000e+00> : vector<32x128xf32>
    %78 = tpu.matmul %75, %77, %cst_32 {dimension_numbers = #tpu.dot_dimension_numbers<[1], [0], [0], [1], [0, 0, 1, 1], [], []>} : vector<32x128xbf16>, vector<128x128xbf16>, vector<32x128xf32> -> vector<32x128xf32>
    %79 = arith.addf %74, %78 : vector<32x128xf32>
    %c0_33 = arith.constant 0 : index
    %c0_34 = arith.constant 0 : index
    %80 = vector.load %arg6[%c0_33, %c0_34] : memref<1x128xf32, #tpu.memory_space<vmem>>, vector<1x128xf32>
    %c0_35 = arith.constant 0 : index
    %c0_36 = arith.constant 0 : index
    %81 = vector.load %arg7[%c0_35, %c0_36] : memref<1x128xf32, #tpu.memory_space<vmem>>, vector<1x128xf32>
    %cst_37 = arith.constant dense<0.000000e+00> : vector<128xf32>
    %82 = vector.multi_reduction <add>, %79, %cst_37 [0] : vector<32x128xf32> to vector<128xf32>
    %83 = vector.shape_cast %82 : vector<128xf32> to vector<1x128xf32>
    %84 = arith.mulf %79, %79 : vector<32x128xf32>
    %cst_38 = arith.constant dense<0.000000e+00> : vector<128xf32>
    %85 = vector.multi_reduction <add>, %84, %cst_38 [0] : vector<32x128xf32> to vector<128xf32>
    %86 = vector.shape_cast %85 : vector<128xf32> to vector<1x128xf32>
    %87 = tpu.concatenate %83, %86 in 0 : vector<1x128xf32>, vector<1x128xf32> -> vector<2x128xf32>
    %c8_i32_39 = arith.constant 8 : i32
    %88 = tpu.dynamic_rotate %87 by %c8_i32_39 dim 1 : vector<2x128xf32>, i32 -> vector<2x128xf32>
    %89 = arith.addf %87, %88 : vector<2x128xf32>
    %c16_i32_40 = arith.constant 16 : i32
    %90 = tpu.dynamic_rotate %89 by %c16_i32_40 dim 1 : vector<2x128xf32>, i32 -> vector<2x128xf32>
    %91 = arith.addf %89, %90 : vector<2x128xf32>
    %c32_i32_41 = arith.constant 32 : i32
    %92 = tpu.dynamic_rotate %91 by %c32_i32_41 dim 1 : vector<2x128xf32>, i32 -> vector<2x128xf32>
    %93 = arith.addf %91, %92 : vector<2x128xf32>
    %c64_i32_42 = arith.constant 64 : i32
    %94 = tpu.dynamic_rotate %93 by %c64_i32_42 dim 1 : vector<2x128xf32>, i32 -> vector<2x128xf32>
    %95 = arith.addf %93, %94 : vector<2x128xf32>
    %96 = vector.extract_strided_slice %95 {offsets = [0, 0], sizes = [1, 128], strides = [1, 1]} : vector<2x128xf32> to vector<1x128xf32>
    %cst_43 = arith.constant 0.001953125 : f32
    %97 = vector.broadcast %cst_43 : f32 to vector<1x128xf32>
    %98 = arith.mulf %96, %97 : vector<1x128xf32>
    %99 = vector.extract_strided_slice %95 {offsets = [1, 0], sizes = [1, 128], strides = [1, 1]} : vector<2x128xf32> to vector<1x128xf32>
    %cst_44 = arith.constant 0.001953125 : f32
    %100 = vector.broadcast %cst_44 : f32 to vector<1x128xf32>
    %101 = arith.mulf %99, %100 : vector<1x128xf32>
    %102 = arith.mulf %98, %98 : vector<1x128xf32>
    %103 = arith.subf %101, %102 : vector<1x128xf32>
    %cst_45 = arith.constant 9.99999974E-6 : f32
    %104 = vector.broadcast %cst_45 : f32 to vector<1x128xf32>
    %105 = arith.addf %103, %104 : vector<1x128xf32>
    %106 = math.rsqrt %105 : vector<1x128xf32>
    %107 = arith.mulf %80, %106 : vector<1x128xf32>
    %108 = arith.mulf %98, %107 : vector<1x128xf32>
    %109 = arith.subf %81, %108 : vector<1x128xf32>
    %110 = vector.broadcast %107 : vector<1x128xf32> to vector<32x128xf32>
    %111 = arith.mulf %79, %110 : vector<32x128xf32>
    %112 = vector.broadcast %109 : vector<1x128xf32> to vector<32x128xf32>
    %113 = arith.addf %111, %112 : vector<32x128xf32>
    %114 = arith.addf %113, %0 : vector<32x128xf32>
    %cst_46 = arith.constant 0.000000e+00 : f32
    %115 = vector.broadcast %cst_46 : f32 to vector<32x128xf32>
    %116 = arith.maximumf %114, %115 : vector<32x128xf32>
    %c0_47 = arith.constant 0 : index
    %c0_48 = arith.constant 0 : index
    %117 = vector.load %arg8[%c0_47, %c0_48] : memref<32x128xf32, #tpu.memory_space<vmem>>, vector<32x128xf32>
    tpu.vector_store %arg8[%c0_47, %c0_48], %116 {strides = array<i32>} : memref<32x128xf32, #tpu.memory_space<vmem>>, vector<32x128xf32>,
    return
  }
  func.func @transform_0(%arg0: i32) -> (i32, i32) {
    %c0_i32 = arith.constant 0 : i32
    %c0_i32_0 = arith.constant 0 : i32
    %c0_i32_1 = arith.constant 0 : i32
    return %c0_i32, %c0_i32_0 : i32, i32
  }
  func.func @transform_1(%arg0: i32) -> (i32, i32, i32) {
    %c0_i32 = arith.constant 0 : i32
    %c0_i32_0 = arith.constant 0 : i32
    %c0_i32_1 = arith.constant 0 : i32
    %c0_i32_2 = arith.constant 0 : i32
    return %c0_i32, %c0_i32_0, %c0_i32_1 : i32, i32, i32
  }
  func.func @transform_2(%arg0: i32) -> (i32, i32, i32) {
    %c0_i32 = arith.constant 0 : i32
    %c0_i32_0 = arith.constant 0 : i32
    %c0_i32_1 = arith.constant 0 : i32
    %c0_i32_2 = arith.constant 0 : i32
    return %c0_i32, %c0_i32_0, %c0_i32_1 : i32, i32, i32
  }
  func.func @transform_3(%arg0: i32) -> (i32, i32) {
    %c0_i32 = arith.constant 0 : i32
    %c0_i32_0 = arith.constant 0 : i32
    %c0_i32_1 = arith.constant 0 : i32
    return %c0_i32, %c0_i32_0 : i32, i32
  }
  func.func @transform_4(%arg0: i32) -> (i32, i32) {
    %c0_i32 = arith.constant 0 : i32
    %c0_i32_0 = arith.constant 0 : i32
    %c0_i32_1 = arith.constant 0 : i32
    return %c0_i32, %c0_i32_0 : i32, i32
  }
  func.func @transform_5(%arg0: i32) -> (i32, i32) {
    %c0_i32 = arith.constant 0 : i32
    %c0_i32_0 = arith.constant 0 : i32
    %c0_i32_1 = arith.constant 0 : i32
    return %c0_i32, %c0_i32_0 : i32, i32
  }
  func.func @transform_6(%arg0: i32) -> (i32, i32) {
    %c0_i32 = arith.constant 0 : i32
    %c0_i32_0 = arith.constant 0 : i32
    %c0_i32_1 = arith.constant 0 : i32
    return %c0_i32, %c0_i32_0 : i32, i32
  }
  func.func @transform_7(%arg0: i32) -> (i32, i32) {
    %c0_i32 = arith.constant 0 : i32
    %c0_i32_0 = arith.constant 0 : i32
    %c0_i32_1 = arith.constant 0 : i32
    return %c0_i32, %c0_i32_0 : i32, i32
  }
}

</mosaic_0001>

<bundles_post_ra>
// kernel: tpu_custom_call.1
= control target key start
LH: loop header
LB: loop body
LE: loop exit
PB: predicated region body
PF: predicated region fallthrough
CT: control target
= control target key end

     0   :  { %12 = vsyncpa [#allocation3], 0  ;;  %s1635_s0 = inlined_call_operand.hbm [shape: f32[32,128], index: 0, kind: input, shape index: {}]   ;;  %s1636_s1 = inlined_call_operand.hbm [shape: bf16[3,128,128], index: 1, kind: input, shape index: {}]   ;;  %s1637_s2 = inlined_call_operand.hbm [shape: bf16[3,128,128], index: 2, kind: input, shape index: {}]   ;;  %s1638_s3 = inlined_call_operand.vmem [shape: f32[1,128], index: 3, kind: input, shape index: {}]   ;;  %s1639_s4 = inlined_call_operand.vmem [shape: f32[1,128], index: 4, kind: input, shape index: {}]   ;;  %s1640_s5 = inlined_call_operand.vmem [shape: f32[1,128], index: 5, kind: input, shape index: {}]   ;;  %s1641_s6 = inlined_call_operand.vmem [shape: f32[1,128], index: 6, kind: input, shape index: {}]   ;;  %s1642_s7 = inlined_call_operand.hbm [shape: f32[32,128], index: 7, kind: output, shape index: {}]  }
   0x1   :  { %13 = vsyncpa [#allocation6], 0 }
   0x2   :  { %14 = vsyncpa [#allocation4], 0  ;;  %s1443_s24 = smov [#allocation5]  }
   0x3   :  { %s32_s25 = sshll.u32 %s1443_s24, 4  ;;  %s33_s25 = int_to_ptr.vmem [resolvable:$true] %s32_s25 }
   0x4   :  { %s1365_s26 = scalar_lea.vmem %s33_s25, 3072  ;;  %p1370_p1 = scmp.lt.s32.totalorder %s33_s25, %s33_s25 }
   0x5   :  { %p1366_p0 = scmp.ne.s32.totalorder %s33_s25, %s1365_s26  ;;  %p1371_p2 = scmp.lt.s32.totalorder %s1365_s26, %s1365_s26 }
   0x7   :  { %p1372_p3 = por %p1371_p2, %p1370_p1 }
   0x9   :  { %p1373_p4 = pnand %p1372_p3, %p1366_p0 }
   0xb   :  { %1376 = shalt.err (!%p1373_p4)
}
   0xc   :  { %s1444_s27 = smov 64   ;;  %s1445_s28 = smov 4  }
   0xd   :  { %38 = dma.hbm_to_vmem [thread:$0]  %s1636_s1, 3072, %s33_s25, [#allocation6], %s1444_s27, %s1444_s27, %s1445_s28  }
   0xe   :  { %s1446_s8 = smov [#allocation2]  }
   0xf   :  { %s20_s9 = sshll.u32 %s1446_s8, 4  ;;  %s21_s9 = int_to_ptr.vmem [resolvable:$true] %s20_s9 }
  0x10   :  { %s1385_s10 = scalar_lea.vmem %s21_s9, 512  ;;  %p1390_p6 = scmp.lt.s32.totalorder %s21_s9, %s21_s9 }
  0x11   :  { %p1386_p5 = scmp.ne.s32.totalorder %s21_s9, %s1385_s10  ;;  %p1391_p7 = scmp.lt.s32.totalorder %s1385_s10, %s1385_s10 }
  0x13   :  { %p1392_p8 = por %p1391_p7, %p1390_p6 }
  0x15   :  { %p1393_p9 = pnand %p1392_p8, %p1386_p5 }
  0x17   :  { %1396 = shalt.err (!%p1393_p9)
}
  0x18   :  { %s1447_s11 = smov 128   ;;  %s1448_s12 = smov 8  }
  0x19   :  { %26 = dma.hbm_to_vmem [thread:$0]  %s1635_s0, 512, %s21_s9, [#allocation3], %s1447_s11, %s1447_s11, %s1448_s12  }
  0x1a   :  { %s1449_s1 = smov [#allocation7]  }
  0x1b   :  { %s44_s15 = sshll.u32 %s1449_s1, 4  ;;  %s45_s15 = int_to_ptr.vmem [resolvable:$true] %s44_s15 }
  0x1c   :  { %s1405_s16 = scalar_lea.vmem %s45_s15, 3072  ;;  %p1410_p11 = scmp.lt.s32.totalorder %s45_s15, %s45_s15 }
  0x1d   :  { %p1406_p10 = scmp.ne.s32.totalorder %s45_s15, %s1405_s16  ;;  %p1411_p12 = scmp.lt.s32.totalorder %s1405_s16, %s1405_s16 }
  0x1f   :  { %p1412_p13 = por %p1411_p12, %p1410_p11 }
  0x21   :  { %p1413_p0 = pnand %p1412_p13, %p1406_p10 }
  0x23   :  { %1416 = shalt.err (!%p1413_p0)
}
  0x24   :  { %50 = dma.hbm_to_vmem [thread:$0]  %s1637_s2, 3072, %s45_s15, [#allocation6], %s1444_s27, %s1444_s27, %s1445_s28  }
  0x25   :  { %1437 = dma.done.wait [#allocation3], 512  }
  0x26   :  { %1438 = vsyncadd [#allocation3], 4294966784 }
  0x27   :  { %1439 = dma.done.wait [#allocation6], 6144  }
  0x28   :  { %1440 = vsyncadd [#allocation6], 4294961152  ;;  %v1305_v0 = vld [vmem:[#allocation5 + $0x78] sm:$0xff]   ;;  %v1307_v2 = vld [vmem:[#allocation5 + $0x70] sm:$0xff]   ;;  %vm77_vm0 = vcmask 1040384   ;;  %vm1450_vm2 = vmmov 1  }
  0x29   :  { %v1306_v1 = vld [vmem:[#allocation5 + $0x38] sm:$0xff]   ;;  %1173 = vmatprep.subr.bf16.mxu0 %v1305_v0  ;;  %v1308_v3 = vld [vmem:[#allocation5 + $0x30] sm:$0xff]   ;;  %v1309_v4 = vld [vmem:[#allocation5 + $0x68] sm:$0xff]   ;;  %vm90_vm4 = vcmask 1046528   ;;  %s1451_s0 = smov 16   ;;  %s1452_s2 = smov 32  }
  0x2a   :  { %1193 = vmatprep.subr.bf16.mxu1 %v1306_v1  ;;  %1174 = vmatpush3.bf16.msra.mxu0 %v1305_v0  ;;  %v1310_v5 = vld [vmem:[#allocation5 + $0x28] sm:$0xff]   ;;  %v1311_v6 = vld [vmem:[#allocation5 + $0x60] sm:$0xff]   ;;  %v1313_v8 = vld [vmem:[#allocation5 + $0x58] sm:$0xff]  }
  0x2b   :  { %1194 = vmatpush3.bf16.msra.mxu1 %v1306_v1  ;;  %1175 = vmatprep.subr.bf16.mxu0 %v1307_v2  ;;  %v1312_v7 = vld [vmem:[#allocation5 + $0x20] sm:$0xff]   ;;  %v1314_v9 = vld [vmem:[#allocation5 + $0x18] sm:$0xff]   ;;  %vm1053_vm1 = vmneg %vm77_vm0 }
  0x2c   :  { %1195 = vmatprep.subr.bf16.mxu1 %v1308_v3  ;;  %v1315_v10 = vld [vmem:[#allocation5 + $0x50] sm:$0xff]   ;;  %v1512_v11 = vld [vmem:[#allocation2] sm:$0xff]  ;;  %v1514_v12 = vld [vmem:[#allocation2 + $0x8] sm:$0xff] }
  0x2d   :  { %v1316_v13 = vld [vmem:[#allocation5 + $0x10] sm:$0xff]   ;;  %v121_v14 = vpack.c.bf16 %v1514_v12, %v1512_v11  ;;  %v78_v15 = vrot.slane %v1512_v11, 7  ;;  %v1317_v16 = vld [vmem:[#allocation5 + $0x48] sm:$0xff]   ;;  %v79_v17 = vrot.slane %v1514_v12, 7  ;;  %vm1521_vm3 = vmpackc.low %vm1450_vm2, %vm1053_vm1  ;;  %v91_v28 = vrot.slane %v1512_v11, 1 }
  0x2e   :  { %1176 = vmatpush3.bf16.msra.mxu0 %v1307_v2  ;;  %v1318_v19 = vld [vmem:[#allocation5 + $0x8] sm:$0xff]   ;;  %v1526_v21 = vld [vmem:[#allocation2 + $0x10] sm:$0xff]  ;;  %v1528_v23 = vld [vmem:[#allocation2 + $0x18] sm:$0xff]  ;;  %v92_v29 = vrot.slane %v1514_v12, 1 }
  0x2f   :  { %1196 = vmatpush3.bf16.msra.mxu1 %v1308_v3  ;;  %1177 = vmatprep.subr.bf16.mxu0 %v1309_v4  ;;  %v80_v20 = vsel %vm77_vm0, %v78_v15, %v79_v17  ;;  %v1319_v24 = vld [vmem:[#allocation5 + $0x40] sm:$0xff]   ;;  %v82_v26 = vrot.slane %v1528_v23, 7  ;;  %v81_v27 = vrot.slane %v1526_v21, 7  ;;  %vm1538_vm5 = vmpackc.low %vm90_vm4, %vm1450_vm2  ;;  %v1321_v31 = vld [vmem:[#allocation5 + $0xb8] sm:$0xff]   ;;  %v122_v34 = vpack.c.bf16 %v1528_v23, %v1526_v21 }
  0x30   :  { %1197 = vmatprep.subr.bf16.mxu1 %v1310_v5  ;;  %1189 = vmatprep.mubr.bf16.mxu0 %v121_v14  ;;  %v1055_v22 = vpack.c.bf16 %v80_v20, %v78_v15  ;;  %v1320_v25 = vld [vmem:[#allocation5] sm:$0xff]   ;;  %v93_v33 = vsel %vm90_vm4, %v91_v28, %v92_v29  ;;  %v1322_v35 = vld [vmem:[#allocation5 + $0xb0] sm:$0xff]   ;;  %v1323_v38 = vld [vmem:[#allocation5 + $0xa8] sm:$0xff]   ;;  %v94_v43 = vrot.slane %v1526_v21, 1  ;;  %v95_v44 = vrot.slane %v1528_v23, 1 }
  0x31   :  { %v83_v32 = vsel %vm77_vm0, %v81_v27, %v82_v26  ;;  %v1070_v37 = vpack.c.bf16 %v92_v29, %v93_v33  ;;  %v1324_v39 = vld [vmem:[#allocation5 + $0xa0] sm:$0xff]   ;;  %v1325_v40 = vld [vmem:[#allocation5 + $0x98] sm:$0xff]   ;;  %v1326_v41 = vld [vmem:[#allocation5 + $0x90] sm:$0xff]  }
  0x32   :  { %1178 = vmatpush3.bf16.msra.mxu0 %v1309_v4  ;;  %1209 = vmatprep.mubr.msk.bf16.mxu1 %vm1521_vm3, %v1055_v22  ;;  %v1059_v36 = vpack.c.bf16 %v83_v32, %v81_v27  ;;  %v1327_v42 = vld [vmem:[#allocation5 + $0x88] sm:$0xff]   ;;  %v1328_v45 = vld [vmem:[#allocation5 + $0x80] sm:$0xff]   ;;  %v96_v46 = vsel %vm90_vm4, %v94_v43, %v95_v44  ;;  %v1333_v43 = vld [vmem:[#allocation7 + $0x30] sm:$0xff]  }
  0x33   :  { %1198 = vmatpush3.bf16.msra.mxu1 %v1310_v5  ;;  %1179 = vmatprep.subr.bf16.mxu0 %v1311_v6  ;;  %v1073_v47 = vpack.c.bf16 %v95_v44, %v96_v46  ;;  %v1334_v44 = vld [vmem:[#allocation7 + $0x60] sm:$0xff]   ;;  %v1336_v46 = vld [vmem:[#allocation7 + $0x58] sm:$0xff]  }
  0x34   :  { %1199 = vmatprep.subr.bf16.mxu1 %v1312_v7 }
  0x36   :  { %1180 = vmatpush3.bf16.msra.mxu0 %v1311_v6 }
  0x37   :  { %1200 = vmatpush3.bf16.msra.mxu1 %v1312_v7  ;;  %1181 = vmatprep.subr.bf16.mxu0 %v1313_v8 }
  0x38   :  { %1201 = vmatprep.subr.bf16.mxu1 %v1314_v9 }
  0x3a   :  { %1182 = vmatpush3.bf16.msra.mxu0 %v1313_v8 }
  0x3b   :  { %1202 = vmatpush3.bf16.msra.mxu1 %v1314_v9  ;;  %1183 = vmatprep.subr.bf16.mxu0 %v1315_v10 }
  0x3c   :  { %1203 = vmatprep.subr.bf16.mxu1 %v1316_v13 }
  0x3e   :  { %1184 = vmatpush3.bf16.msra.mxu0 %v1315_v10 }
  0x3f   :  { %1204 = vmatpush3.bf16.msra.mxu1 %v1316_v13  ;;  %1185 = vmatprep.subr.bf16.mxu0 %v1317_v16 }
  0x40   :  { %1205 = vmatprep.subr.bf16.mxu1 %v1318_v19 }
  0x42   :  { %1186 = vmatpush3.bf16.msra.mxu0 %v1317_v16 }
  0x43   :  { %1206 = vmatpush3.bf16.msra.mxu1 %v1318_v19  ;;  %1187 = vmatprep.subr.bf16.mxu0 %v1319_v24 }
  0x44   :  { %1207 = vmatprep.subr.bf16.mxu1 %v1320_v25 }
  0x46   :  { %1188 = vmatpush3.bf16.msra.mxu0 %v1319_v24 }
  0x47   :  { %1208 = vmatpush3.bf16.msra.mxu1 %v1320_v25  ;;  %1213 = vmatprep.subr.bf16.mxu0 %v1321_v31 }
  0x49   :  { %1190 = vmatmul.mubr.bf16.vlgmr.msra.gmra.mxu0 %v122_v34 }
  0x4a   :  { %1210 = vmatmul.mubr.msk.bf16.vlgmr.msra.gmra.mxu1 %vm1521_vm3, %v1059_v36  ;;  %1214 = vmatpush3.bf16.msra.mxu0 %v1321_v31 }
  0x4b   :  { %1215 = vmatprep.subr.bf16.mxu0 %v1322_v35  ;;  %1229 = vmatprep.mubr.msk.bf16.mxu0 %vm1538_vm5, %v1070_v37 }
  0x4e   :  { %1216 = vmatpush3.bf16.msra.mxu0 %v1322_v35 }
  0x4f   :  { %1217 = vmatprep.subr.bf16.mxu0 %v1323_v38 }
  0x52   :  { %1218 = vmatpush3.bf16.msra.mxu0 %v1323_v38 }
  0x53   :  { %1219 = vmatprep.subr.bf16.mxu0 %v1324_v39 }
  0x56   :  { %1220 = vmatpush3.bf16.msra.mxu0 %v1324_v39  ;;  %v1329_v39 = vld [vmem:[#allocation7 + $0x78] sm:$0xff]  }
  0x57   :  { %1221 = vmatprep.subr.bf16.mxu0 %v1325_v40  ;;  %1233 = vmatprep.subr.bf16.mxu1 %v1329_v39 }
  0x58   :  { %1234 = vmatpush3.bf16.msra.mxu1 %v1329_v39 }
  0x5a   :  { %1222 = vmatpush3.bf16.msra.mxu0 %v1325_v40  ;;  %v1330_v40 = vld [vmem:[#allocation7 + $0x70] sm:$0xff]  }
  0x5b   :  { %1223 = vmatprep.subr.bf16.mxu0 %v1326_v41  ;;  %1235 = vmatprep.subr.bf16.mxu1 %v1330_v40 }
  0x5c   :  { %1236 = vmatpush3.bf16.msra.mxu1 %v1330_v40 }
  0x5e   :  { %1224 = vmatpush3.bf16.msra.mxu0 %v1326_v41  ;;  %v1331_v41 = vld [vmem:[#allocation7 + $0x38] sm:$0xff]  }
  0x5f   :  { %1225 = vmatprep.subr.bf16.mxu0 %v1327_v42 }
  0x62   :  { %1226 = vmatpush3.bf16.msra.mxu0 %v1327_v42  ;;  %v1332_v42 = vld [vmem:[#allocation7 + $0x68] sm:$0xff]  }
  0x63   :  { %1227 = vmatprep.subr.bf16.mxu0 %v1328_v45  ;;  %1237 = vmatprep.subr.bf16.mxu1 %v1332_v42 }
  0x64   :  { %1238 = vmatpush3.bf16.msra.mxu1 %v1332_v42 }
  0x65   :  { %1239 = vmatprep.subr.bf16.mxu1 %v1334_v44 }
  0x66   :  { %1228 = vmatpush3.bf16.msra.mxu0 %v1328_v45  ;;  %v1335_v45 = vld [vmem:[#allocation7 + $0x28] sm:$0xff]  }
  0x67   :  { %1253 = vmatprep.subr.bf16.mxu0 %v1331_v41 }
  0x68   :  { %1240 = vmatpush3.bf16.msra.mxu1 %v1334_v44 }
  0x69   :  { %1230 = vmatmul.mubr.msk.bf16.vlgmr.msra.gmra.mxu0 %vm1538_vm5, %v1073_v47  ;;  %v1337_v47 = vld [vmem:[#allocation7 + $0x20] sm:$0xff]   ;;  %1241 = vmatprep.subr.bf16.mxu1 %v1336_v46 }
  0x6a   :  { %1254 = vmatpush3.bf16.msra.mxu0 %v1331_v41 }
  0x6b   :  { %1255 = vmatprep.subr.bf16.mxu0 %v1333_v43 }
  0x6c   :  { %1242 = vmatpush3.bf16.msra.mxu1 %v1336_v46 }
  0x6e   :  { %1256 = vmatpush3.bf16.msra.mxu0 %v1333_v43 }
  0x6f   :  { %1257 = vmatprep.subr.bf16.mxu0 %v1335_v45 }
  0x72   :  { %1258 = vmatpush3.bf16.msra.mxu0 %v1335_v45 }
  0x73   :  { %1259 = vmatprep.subr.bf16.mxu0 %v1337_v47 }
  0x76   :  { %1260 = vmatpush3.bf16.msra.mxu0 %v1337_v47 }
 0x109   :  { %v1191_v48 = vpop.f32.mrf.mxu0 }
 0x10a   :  { %v1211_v49 = vpop.f32.mrf.mxu1 }
 0x10b   :  { %v222_v50 = vpop.f32.mrf.mxu0  ;;  %v328_v60 = vadd.f32 %v1211_v49, %v1191_v48  ;;  %v1338_v48 = vld [vmem:[#allocation7 + $0x50] sm:$0xff]   ;;  %v1339_v49 = vld [vmem:[#allocation7 + $0x18] sm:$0xff]  }
 0x10c   :  { %v319_v51 = vpop.f32.mrf.mxu1  ;;  %1243 = vmatprep.subr.bf16.mxu1 %v1338_v48  ;;  %1261 = vmatprep.subr.bf16.mxu0 %v1339_v49 }
 0x10d   :  { %v1192_v52 = vpop.f32.mrf.mxu0  ;;  %v320_v58 = vadd.f32 %v319_v51, %v222_v50  ;;  %1244 = vmatpush3.bf16.msra.mxu1 %v1338_v48  ;;  %1262 = vmatpush3.bf16.msra.mxu0 %v1339_v49  ;;  %v1340_v50 = vld [vmem:[#allocation7 + $0x48] sm:$0xff]   ;;  %v1341_v51 = vld [vmem:[#allocation7 + $0x10] sm:$0xff]  }
 0x10e   :  { %v1212_v53 = vpop.f32.mrf.mxu1  ;;  %1245 = vmatprep.subr.bf16.mxu1 %v1340_v50  ;;  %1263 = vmatprep.subr.bf16.mxu0 %v1341_v51 }
 0x10f   :  { %v225_v54 = vpop.f32.mrf.mxu0  ;;  %v331_v0 = vadd.f32 %v1212_v53, %v1192_v52  ;;  %v1342_v52 = vld [vmem:[#allocation7 + $0x40] sm:$0xff]   ;;  %v1343_v53 = vld [vmem:[#allocation7 + $0x8] sm:$0xff]  }
 0x110   :  { %v322_v56 = vpop.f32.mrf.mxu1 }
 0x111   :  { %v323_v61 = vadd.f32 %v322_v56, %v225_v54  ;;  %1246 = vmatpush3.bf16.msra.mxu1 %v1340_v50  ;;  %1264 = vmatpush3.bf16.msra.mxu0 %v1341_v51  ;;  %v1344_v54 = vld [vmem:[#allocation7] sm:$0xff]   ;;  %v1347_v50 = vld [vmem:[#allocation7 + $0xa8] sm:$0xff]  }
 0x112   :  { %1247 = vmatprep.subr.bf16.mxu1 %v1342_v52  ;;  %1265 = vmatprep.subr.bf16.mxu0 %v1343_v53  ;;  %v1348_v51 = vld [vmem:[#allocation7 + $0xa0] sm:$0xff]  }
 0x115   :  { %1248 = vmatpush3.bf16.msra.mxu1 %v1342_v52  ;;  %1266 = vmatpush3.bf16.msra.mxu0 %v1343_v53  ;;  %v1349_v52 = vld [vmem:[#allocation7 + $0x98] sm:$0xff]   ;;  %v1350_v53 = vld [vmem:[#allocation7 + $0x90] sm:$0xff]  }
 0x116   :  { %1267 = vmatprep.subr.bf16.mxu0 %v1344_v54 }
 0x119   :  { %1268 = vmatpush3.bf16.msra.mxu0 %v1344_v54  ;;  %v1351_v54 = vld [vmem:[#allocation7 + $0x88] sm:$0xff]  }
 0x129   :  { %v1231_v55 = vpop.f32.mrf.mxu0 }
 0x12a   :  { %v1557_v1 = vadd.f32 %v1231_v55, %v328_v60  ;;  %v1345_v55 = vld [vmem:[#allocation7 + $0xb8] sm:$0xff]  }
 0x12b   :  { %v435_v57 = vpop.f32.mrf.mxu0  ;;  %1273 = vmatprep.subr.bf16.mxu1 %v1345_v55 }
 0x12c   :  { %v1555_v62 = vadd.f32 %v435_v57, %v320_v58  ;;  %v467_v7 = vmul.f32 %v1557_v1, %v1557_v1 }
 0x12d   :  { %v1232_v59 = vpop.f32.mrf.mxu0 }
 0x12e   :  { %v465_v3 = vmul.f32 %v1555_v62, %v1555_v62  ;;  %v1563_v4 = vadd.f32 %v1232_v59, %v331_v0  ;;  %v1453_v0 = vmov 1966171168  }
 0x12f   :  { %v438_v63 = vpop.f32.mrf.mxu0 }
 0x130   :  { %v1559_v2 = vadd.f32 %v438_v63, %v323_v61  ;;  %v468_v10 = vmul.f32 %v1563_v4, %v1563_v4 }
 0x132   :  { %v456_v5 = vadd.f32 %v1559_v2, %v1555_v62  ;;  %v466_v6 = vmul.f32 %v1559_v2, %v1559_v2 }
 0x134   :  { %v457_v8 = vadd.f32 %v456_v5, %v1557_v1  ;;  %v469_v9 = vadd.f32 %v466_v6, %v465_v3  ;;  %v501_v3 = vunpack.c.l.s4 %v1453_v0  ;;  %v503_v5 = vlaneseq }
 0x136   :  { %v458_v13 = vadd.f32 %v457_v8, %v1563_v4  ;;  %v470_v14 = vadd.f32 %v469_v9, %v467_v7  ;;  %v502_v6 = vunpack.c.0.s8 %v501_v3  ;;  %v504_v7 = vshrl.u32 %v503_v5, 7 }
 0x138   :  { %v459_v15 = vrot.slane %v458_v13, 4  ;;  %v471_v16 = vadd.f32 %v470_v14, %v468_v10  ;;  %v1580_v8 = vsub.s32 %v502_v6, %v504_v7  ;;  %v454_v14 = vld [vmem:[%s1638_s3] sm:$0x1] }
 0x13a   :  { %v460_v17 = vadd.f32 %v459_v15, %v458_v13  ;;  %v472_v19 = vrot.slane %v471_v16, 4  ;;  %v1586_v15 = vsub.s32 0, %v504_v7 }
 0x13c   :  { %v461_v20 = vrot.slane %v460_v17, 2  ;;  %v473_v22 = vadd.f32 %v472_v19, %v471_v16  ;;  %v455_v19 = vld [vmem:[%s1639_s4] sm:$0x1] }
 0x13e   :  { %v462_v24 = vadd.f32 %v461_v20, %v460_v17  ;;  %v474_v25 = vrot.slane %v473_v22, 2 }
 0x140   :  { %v463_v26 = vrot.slane %v462_v24, 1  ;;  %v475_v27 = vadd.f32 %v474_v25, %v473_v22 }
 0x142   :  { %v476_v28 = vrot.slane %v475_v27, 1  ;;  %v464_v29 = vadd.f32 %v463_v26, %v462_v24 }
 0x144   :  { %v477_v31 = vadd.f32 %v476_v28, %v475_v27 }
 0x146   :  { %v478_v32 = vsel %vm77_vm0, %v464_v29, %v477_v31 }
 0x147   :  { %479 = vrot.lane.b32.xlu0 %v478_v32, %s1448_s12 }
 0x1b9   :  { %v480_v33 = vpop.permute.xlu0 %479 }
 0x1ba   :  { %v481_v34 = vadd.f32 %v480_v33, %v478_v32 }
 0x1bc   :  { %482 = vrot.lane.b32.xlu0 %v481_v34, %s1451_s0 }
 0x22e   :  { %v483_v35 = vpop.permute.xlu0 %482 }
 0x22f   :  { %v484_v36 = vadd.f32 %v483_v35, %v481_v34 }
 0x231   :  { %485 = vrot.lane.b32.xlu1 %v484_v36, %s1452_s2 }
 0x2a3   :  { %v486_v37 = vpop.permute.xlu1 %485 }
 0x2a4   :  { %v487_v38 = vadd.f32 %v486_v37, %v484_v36 }
 0x2a6   :  { %488 = vrot.lane.b32.xlu1 %v487_v38, %s1444_s27 }
 0x318   :  { %v489_v56 = vpop.permute.xlu1 %488 }
 0x319   :  { %v490_v57 = vadd.f32 %v489_v56, %v487_v38 }
 0x31b   :  { %v491_v58 = vmul.f32 0.001953125, %v490_v57 }
 0x31d   :  { %v492_v59 = vmul.f32 %v491_v58, %v491_v58 }
 0x31f   :  { %v494_v60 = vrot.slane %v492_v59, 7 }
 0x321   :  { %v496_v61 = vsub.f32 %v491_v58, %v494_v60 }
 0x323   :  { %v497_v63 = vadd.f32 1e-05, %v496_v61 }
 0x325   :  { %1353 = vrsqrt.f32 %v497_v63 }
 0x332   :  { %v1354_v9 = vpop.eup %1353 }
 0x333   :  { %v506_v10 = vrot.slane %v1354_v9, %v1580_v8 }
 0x335   :  { %v507_v13 = vcombine.high %v506_v10, %v506_v10 }
 0x337   :  { %v514_v16 = vrot.slane %v507_v13, %v1580_v8 }
 0x339   :  { %v516_v17 = vmul.f32 %v514_v16, %v454_v14 }
 0x33b   :  { %v517_v20 = vmul.f32 %v516_v17, %v491_v58  ;;  %v523_v22 = vrot.slane %v516_v17, %v1586_v15 }
 0x33d   :  { %v518_v24 = vsub.f32 %v455_v19, %v517_v20  ;;  %v525_v25 = vmul.f32 %v523_v22, %v1555_v62  ;;  %v526_v27 = vmul.f32 %v523_v22, %v1559_v2  ;;  %v527_v28 = vmul.f32 %v523_v22, %v1557_v1  ;;  %v1346_v2 = vld [vmem:[#allocation7 + $0xb0] sm:$0xff]  }
 0x33e   :  { %v528_v29 = vmul.f32 %v523_v22, %v1563_v4 }
 0x33f   :  { %v533_v26 = vrot.slane %v518_v24, %v1586_v15 }
 0x341   :  { %v535_v31 = vadd.f32 %v533_v26, %v525_v25  ;;  %v536_v32 = vadd.f32 %v533_v26, %v526_v27  ;;  %v537_v33 = vadd.f32 %v533_v26, %v527_v28  ;;  %v538_v34 = vadd.f32 %v533_v26, %v528_v29 }
 0x343   :  { %v539_v35 = vmax.f32 %v535_v31, 0.0  ;;  %v540_v36 = vmax.f32 %v536_v32, 0.0  ;;  %v541_v37 = vmax.f32 %v537_v33, 0.0  ;;  %v542_v38 = vmax.f32 %v538_v34, 0.0 }
 0x345   :  { %v589_v39 = vpack.c.bf16 %v540_v36, %v539_v35  ;;  %v551_v40 = vrot.slane %v542_v38, 7  ;;  %v590_v41 = vpack.c.bf16 %v542_v38, %v541_v37  ;;  %v547_v62 = vrot.slane %v539_v35, 7 }
 0x346   :  { %v548_v42 = vrot.slane %v540_v36, 7  ;;  %v559_v43 = vrot.slane %v539_v35, 1  ;;  %v560_v44 = vrot.slane %v540_v36, 1  ;;  %v550_v1 = vrot.slane %v541_v37, 7 }
 0x347   :  { %1249 = vmatprep.mubr.bf16.mxu1 %v589_v39  ;;  %v562_v56 = vrot.slane %v541_v37, 1  ;;  %v563_v57 = vrot.slane %v542_v38, 1 }
 0x348   :  { %1250 = vmatmul.mubr.bf16.vlgmr.msra.gmra.mxu1 %v590_v41  ;;  %v549_v4 = vsel %vm77_vm0, %v547_v62, %v548_v42  ;;  %v561_v45 = vsel %vm90_vm4, %v559_v43, %v560_v44  ;;  %v552_v48 = vsel %vm77_vm0, %v550_v1, %v551_v40 }
 0x349   :  { %1274 = vmatpush3.bf16.msra.mxu1 %v1345_v55  ;;  %v1093_v46 = vpack.c.bf16 %v549_v4, %v547_v62  ;;  %v1108_v47 = vpack.c.bf16 %v560_v44, %v561_v45  ;;  %v1097_v49 = vpack.c.bf16 %v552_v48, %v550_v1  ;;  %v1352_v55 = vld [vmem:[#allocation7 + $0x80] sm:$0xff]   ;;  %v564_v18 = vsel %vm90_vm4, %v562_v56, %v563_v57 }
 0x34a   :  { %1275 = vmatprep.subr.bf16.mxu1 %v1346_v2  ;;  %v1111_v58 = vpack.c.bf16 %v563_v57, %v564_v18 }
 0x34b   :  { %1269 = vmatprep.mubr.msk.bf16.mxu0 %vm1521_vm3, %v1093_v46  ;;  %1289 = vmatprep.mubr.msk.bf16.mxu1 %vm1538_vm5, %v1108_v47 }
 0x34c   :  { %1270 = vmatmul.mubr.msk.bf16.vlgmr.msra.gmra.mxu0 %vm1521_vm3, %v1097_v49 }
 0x34d   :  { %1276 = vmatpush3.bf16.msra.mxu1 %v1346_v2 }
 0x34e   :  { %1277 = vmatprep.subr.bf16.mxu1 %v1347_v50 }
 0x351   :  { %1278 = vmatpush3.bf16.msra.mxu1 %v1347_v50 }
 0x352   :  { %1279 = vmatprep.subr.bf16.mxu1 %v1348_v51 }
 0x355   :  { %1280 = vmatpush3.bf16.msra.mxu1 %v1348_v51 }
 0x356   :  { %1281 = vmatprep.subr.bf16.mxu1 %v1349_v52 }
 0x359   :  { %1282 = vmatpush3.bf16.msra.mxu1 %v1349_v52 }
 0x35a   :  { %1283 = vmatprep.subr.bf16.mxu1 %v1350_v53 }
 0x35d   :  { %1284 = vmatpush3.bf16.msra.mxu1 %v1350_v53 }
 0x35e   :  { %1285 = vmatprep.subr.bf16.mxu1 %v1351_v54 }
 0x361   :  { %1286 = vmatpush3.bf16.msra.mxu1 %v1351_v54 }
 0x362   :  { %1287 = vmatprep.subr.bf16.mxu1 %v1352_v55 }
 0x365   :  { %1288 = vmatpush3.bf16.msra.mxu1 %v1352_v55 }
 0x368   :  { %1290 = vmatmul.mubr.msk.bf16.vlgmr.msra.gmra.mxu1 %vm1538_vm5, %v1111_v58 }
 0x408   :  { %v1251_v59 = vpop.f32.mrf.mxu1 }
 0x40a   :  { %v690_v60 = vpop.f32.mrf.mxu1 }
 0x40c   :  { %v1271_v61 = vpop.f32.mrf.mxu0  ;;  %v1252_v63 = vpop.f32.mrf.mxu1 }
 0x40d   :  { %v796_v14 = vadd.f32 %v1271_v61, %v1251_v59 }
 0x40e   :  { %v787_v0 = vpop.f32.mrf.mxu0  ;;  %v693_v3 = vpop.f32.mrf.mxu1 }
 0x40f   :  { %v788_v10 = vadd.f32 %v787_v0, %v690_v60  ;;  %v922_v60 = vld [vmem:[%s1640_s5] sm:$0x1]  ;;  %s1454_s5 = smov [#allocation8]  }
 0x410   :  { %v1272_v5 = vpop.f32.mrf.mxu0  ;;  %v923_v0 = vld [vmem:[%s1641_s6] sm:$0x1]  ;;  %s1024_s25 = sshll.u32 %s1454_s5, 4  ;;  %s1025_s25 = int_to_ptr.vmem [resolvable:$true] %s1024_s25 }
 0x411   :  { %v799_v20 = vadd.f32 %v1272_v5, %v1252_v63  ;;  %s1417_s6 = scalar_lea.vmem %s1025_s25, 512  ;;  %p1422_p2 = scmp.lt.s32.totalorder %s1025_s25, %s1025_s25 }
 0x412   :  { %v790_v7 = vpop.f32.mrf.mxu0  ;;  %p1418_p1 = scmp.ne.s32.totalorder %s1025_s25, %s1417_s6  ;;  %p1423_p3 = scmp.lt.s32.totalorder %s1417_s6, %s1417_s6 }
 0x413   :  { %v791_v16 = vadd.f32 %v790_v7, %v693_v3 }
 0x414   :  { %p1424_p4 = por %p1423_p3, %p1422_p2 }
 0x416   :  { %p1425_p5 = pnand %p1424_p4, %p1418_p1 }
 0x428   :  { %v1291_v6 = vpop.f32.mrf.mxu1 }
 0x429   :  { %v920_v22 = vadd.f32 %v1291_v6, %v796_v14 }
 0x42a   :  { %v903_v9 = vpop.f32.mrf.mxu1 }
 0x42b   :  { %v918_v17 = vadd.f32 %v903_v9, %v788_v10  ;;  %v935_v28 = vmul.f32 %v920_v22, %v920_v22 }
 0x42c   :  { %v1292_v13 = vpop.f32.mrf.mxu1 }
 0x42d   :  { %v933_v24 = vmul.f32 %v918_v17, %v918_v17  ;;  %v921_v25 = vadd.f32 %v1292_v13, %v799_v20 }
 0x42e   :  { %v906_v19 = vpop.f32.mrf.mxu1 }
 0x42f   :  { %v919_v30 = vadd.f32 %v906_v19, %v791_v16  ;;  %v936_v32 = vmul.f32 %v921_v25, %v921_v25 }
 0x431   :  { %v924_v26 = vadd.f32 %v919_v30, %v918_v17  ;;  %v934_v27 = vmul.f32 %v919_v30, %v919_v30 }
 0x433   :  { %v925_v29 = vadd.f32 %v924_v26, %v920_v22  ;;  %v937_v31 = vadd.f32 %v934_v27, %v933_v24 }
 0x435   :  { %v926_v33 = vadd.f32 %v925_v29, %v921_v25  ;;  %v938_v34 = vadd.f32 %v937_v31, %v935_v28 }
 0x437   :  { %v927_v35 = vrot.slane %v926_v33, 4  ;;  %v939_v36 = vadd.f32 %v938_v34, %v936_v32 }
 0x439   :  { %v928_v37 = vadd.f32 %v927_v35, %v926_v33  ;;  %v940_v38 = vrot.slane %v939_v36, 4 }
 0x43b   :  { %v929_v39 = vrot.slane %v928_v37, 2  ;;  %v941_v40 = vadd.f32 %v940_v38, %v939_v36 }
 0x43d   :  { %v930_v41 = vadd.f32 %v929_v39, %v928_v37  ;;  %v942_v62 = vrot.slane %v941_v40, 2 }
 0x43f   :  { %v931_v42 = vrot.slane %v930_v41, 1  ;;  %v943_v43 = vadd.f32 %v942_v62, %v941_v40 }
 0x441   :  { %v944_v44 = vrot.slane %v943_v43, 1  ;;  %v932_v2 = vadd.f32 %v931_v42, %v930_v41 }
 0x443   :  { %v945_v1 = vadd.f32 %v944_v44, %v943_v43 }
 0x445   :  { %v946_v4 = vsel %vm77_vm0, %v932_v2, %v945_v1 }
 0x446   :  { %947 = vrot.lane.b32.xlu0 %v946_v4, %s1448_s12 }
 0x4b8   :  { %v948_v45 = vpop.permute.xlu0 %947 }
 0x4b9   :  { %v949_v46 = vadd.f32 %v948_v45, %v946_v4 }
 0x4bb   :  { %950 = vrot.lane.b32.xlu1 %v949_v46, %s1451_s0 }
 0x52d   :  { %v951_v47 = vpop.permute.xlu1 %950 }
 0x52e   :  { %v952_v48 = vadd.f32 %v951_v47, %v949_v46 }
 0x530   :  { %953 = vrot.lane.b32.xlu0 %v952_v48, %s1452_s2 }
 0x5a2   :  { %v954_v49 = vpop.permute.xlu0 %953 }
 0x5a3   :  { %v955_v50 = vadd.f32 %v954_v49, %v952_v48 }
 0x5a5   :  { %956 = vrot.lane.b32.xlu1 %v955_v50, %s1444_s27 }
 0x617   :  { %v957_v51 = vpop.permute.xlu1 %956 }
 0x618   :  { %v958_v52 = vadd.f32 %v957_v51, %v955_v50 }
 0x61a   :  { %v959_v53 = vmul.f32 0.001953125, %v958_v52 }
 0x61c   :  { %v960_v54 = vmul.f32 %v959_v53, %v959_v53 }
 0x61e   :  { %v962_v55 = vrot.slane %v960_v54, 7 }
 0x620   :  { %v964_v56 = vsub.f32 %v959_v53, %v962_v55 }
 0x622   :  { %v965_v57 = vadd.f32 1e-05, %v964_v56 }
 0x624   :  { %1355 = vrsqrt.f32 %v965_v57 }
 0x631   :  { %v1356_v18 = vpop.eup %1355 }
 0x632   :  { %v974_v58 = vrot.slane %v1356_v18, %v1580_v8 }
 0x634   :  { %v975_v59 = vcombine.high %v974_v58, %v974_v58 }
 0x636   :  { %v982_v61 = vrot.slane %v975_v59, %v1580_v8 }
 0x638   :  { %v984_v63 = vmul.f32 %v982_v61, %v922_v60 }
 0x63a   :  { %v985_v3 = vmul.f32 %v984_v63, %v959_v53  ;;  %v991_v5 = vrot.slane %v984_v63, %v1586_v15 }
 0x63c   :  { %v986_v6 = vsub.f32 %v923_v0, %v985_v3  ;;  %v993_v7 = vmul.f32 %v991_v5, %v918_v17  ;;  %v994_v10 = vmul.f32 %v991_v5, %v919_v30  ;;  %v995_v13 = vmul.f32 %v991_v5, %v920_v22 }
 0x63d   :  { %v996_v14 = vmul.f32 %v991_v5, %v921_v25 }
 0x63e   :  { %v1001_v9 = vrot.slane %v986_v6, %v1586_v15 }
 0x640   :  { %v1003_v16 = vadd.f32 %v1001_v9, %v993_v7  ;;  %v1004_v19 = vadd.f32 %v1001_v9, %v994_v10  ;;  %v1005_v20 = vadd.f32 %v1001_v9, %v995_v13  ;;  %v1006_v24 = vadd.f32 %v1001_v9, %v996_v14 }
 0x642   :  { %v1007_v8 = vadd.f32 %v1003_v16, %v1512_v11  ;;  %v1008_v26 = vadd.f32 %v1004_v19, %v1514_v12  ;;  %v1009_v27 = vadd.f32 %v1005_v20, %v1526_v21  ;;  %v1010_v28 = vadd.f32 %v1006_v24, %v1528_v23 }
 0x644   :  { %v1011_v17 = vmax.f32 %v1007_v8, 0.0  ;;  %v1012_v29 = vmax.f32 %v1008_v26, 0.0  ;;  %v1013_v15 = vmax.f32 %v1009_v27, 0.0  ;;  %v1014_v30 = vmax.f32 %v1010_v28, 0.0 }
 0x646   :  { %1015 = vst [vmem:[#allocation8] sm:$0xff] %v1011_v17  ;;  %1016 = vst [vmem:[#allocation8 + $0x8] sm:$0xff] %v1012_v29 }
 0x647   :  { %1017 = vst [vmem:[#allocation8 + $0x10] sm:$0xff] %v1013_v15  ;;  %1018 = vst [vmem:[#allocation8 + $0x18] sm:$0xff] %v1014_v30 }
 0x648   :  { %1428 = shalt.err (!%p1425_p5)
}
 0x649   :  { %1030 = dma.vmem_to_hbm [thread:$0]  %s1025_s25, 512, %s1642_s7, [#allocation4], %s1447_s11, %s1447_s11, %s1448_s12  }
 0x64a   :  { %1441 = dma.done.wait [#allocation4], 512  }
 0x64b   :  { %1442 = vsyncadd [#allocation4], 4294966784 }
 0x64c   :  { %1034 = vsyncpa [#allocation3], 1 }
 0x64d   :  { %1035 = vsyncpa [#allocation6], 1 }
 0x64e   :  { %1036 = vsyncpa [#allocation4], 1 }

</bundles_post_ra>
